<compile_context>
chip_gen: v5e
topology: v5e:2x2
jax: 0.10.0
libtpu: 0.0.40
codegen_flags: <defaults>
</compile_context>

<pallas_src>
import jax
import jax.numpy as jnp
from jax.experimental import pallas as pl
from jax.experimental.pallas import tpu as pltpu


def _h_sigmoid_kernel(x_ref, o_ref):
    x = x_ref[...]
    y = jnp.clip(x + 3.0, 0.0, 6.0) * (1.0 / 6.0)
    o_ref[...] = y.astype(o_ref.dtype)


# ~2 MiB per block; with input+output each double-buffered the pipeline footprint is
# ~8 MiB, comfortably inside the default scoped VMEM on all of v5e/v6e/v7x.
_TARGET_BLOCK_BYTES = 2 * 1024 * 1024


def h_sigmoid(x: jax.Array) -> jax.Array:
    """Elementwise hard-sigmoid implemented as a Pallas TPU kernel.

    Works for any floating input shape/dtype. Purely HBM-bandwidth bound, so the
    wrapper just presents a lane-dense 2D slab to the kernel and tiles it with
    ~2 MiB blocks.
    """
    orig_shape = x.shape
    orig_dtype = x.dtype
    itemsize = jnp.dtype(orig_dtype).itemsize

    flat = x.reshape(-1)
    n = flat.shape[0]

    # Minimal padding: only up to a multiple of 128, and only when actually needed.
    n_pad = ((n + 127) // 128) * 128
    padded = n_pad != n
    if padded:
        flat = jnp.pad(flat, (0, n_pad - n))

    # Lane-dense slab: widest last dim (multiple of 128) that divides n_pad.
    lane = 128
    for cand in (2048, 1024, 512, 256):
        if n_pad % cand == 0:
            lane = cand
            break
    rows = n_pad // lane

    # Block rows sized for ~_TARGET_BLOCK_BYTES per block.
    tile_rows = max(16, _TARGET_BLOCK_BYTES // (lane * itemsize))
    if tile_rows >= rows:
        tile_rows = rows                     # single block covering the full row dim
    else:
        tile_rows = (tile_rows // 16) * 16   # multiple of 16: safe sublane tiling for f32/bf16

    grid = (pl.cdiv(rows, tile_rows),)
    x2d = flat.reshape(rows, lane)

    out2d = pl.pallas_call(
        _h_sigmoid_kernel,
        out_shape=jax.ShapeDtypeStruct((rows, lane), orig_dtype),
        grid_spec=pltpu.PrefetchScalarGridSpec(
            num_scalar_prefetch=0,
            grid=grid,
            in_specs=[pl.BlockSpec((tile_rows, lane), lambda i: (i, 0))],
            out_specs=pl.BlockSpec((tile_rows, lane), lambda i: (i, 0)),
        ),
        compiler_params=pltpu.CompilerParams(
            dimension_semantics=("parallel",),
        ),
    )(x2d)

    if padded:
        return out2d.reshape(-1)[:n].reshape(orig_shape)
    return out2d.reshape(orig_shape)


if __name__ == "__main__":
    key = jax.random.PRNGKey(0)
    # NCHW, small shapes consistent with the module: batch=2, channels=4, spatial=16x16
    x = jax.random.normal(key, (2, 4, 16, 16), dtype=jnp.float32) * 4.0

    y = h_sigmoid(x)
    y = jax.block_until_ready(y)

    # Reference check in plain JAX (same semantics as torch ReLU6(x+3)/6)
    y_ref = jnp.clip(x + 3.0, 0.0, 6.0) / 6.0
    assert y.shape == x.shape and y.dtype == x.dtype
    assert jnp.allclose(y, y_ref, atol=1e-6), "mismatch vs reference"

    print("KERNEL_OK")
</pallas_src>

<mosaic_0001>
module attributes {stable_mosaic.version = 11 : i64} {
  func.func @_h_sigmoid_kernel(%arg0: i32, %arg1: memref<1x2048xf32, #tpu.memory_space<vmem>>, %arg2: memref<1x2048xf32, #tpu.memory_space<vmem>>) attributes {dimension_semantics = [#tpu.dimension_semantics<parallel>], iteration_bounds = array<i64: 1>, scalar_prefetch = 0 : i64, scratch_operands = 0 : i64, tpu.core_type = #tpu.core_type<tc>, window_params = [{transform_indices = @transform_0, window_bounds = array<i64: 1, 2048>}, {transform_indices = @transform_1, window_bounds = array<i64: 1, 2048>}]} {
    %c0 = arith.constant 0 : index
    %c0_0 = arith.constant 0 : index
    %0 = vector.load %arg1[%c0, %c0_0] : memref<1x2048xf32, #tpu.memory_space<vmem>>, vector<1x2048xf32>
    %cst = arith.constant 3.000000e+00 : f32
    %1 = vector.broadcast %cst : f32 to vector<1x2048xf32>
    %2 = arith.addf %0, %1 : vector<1x2048xf32>
    %cst_1 = arith.constant 0.000000e+00 : f32
    %cst_2 = arith.constant 6.000000e+00 : f32
    %3 = vector.broadcast %cst_1 : f32 to vector<1x2048xf32>
    %4 = arith.maximumf %3, %2 : vector<1x2048xf32>
    %5 = vector.broadcast %cst_2 : f32 to vector<1x2048xf32>
    %6 = arith.minimumf %5, %4 : vector<1x2048xf32>
    %cst_3 = arith.constant 0.166666672 : f32
    %7 = vector.broadcast %cst_3 : f32 to vector<1x2048xf32>
    %8 = arith.mulf %6, %7 : vector<1x2048xf32>
    %c0_4 = arith.constant 0 : index
    %c0_5 = arith.constant 0 : index
    %9 = vector.load %arg2[%c0_4, %c0_5] : memref<1x2048xf32, #tpu.memory_space<vmem>>, vector<1x2048xf32>
    tpu.vector_store %arg2[%c0_4, %c0_5], %8 {strides = array<i32>} : memref<1x2048xf32, #tpu.memory_space<vmem>>, vector<1x2048xf32>,
    return
  }
  func.func @transform_0(%arg0: i32) -> (i32, i32) {
    %c0_i32 = arith.constant 0 : i32
    %c0_i32_0 = arith.constant 0 : i32
    return %arg0, %c0_i32 : i32, i32
  }
  func.func @transform_1(%arg0: i32) -> (i32, i32) {
    %c0_i32 = arith.constant 0 : i32
    %c0_i32_0 = arith.constant 0 : i32
    return %arg0, %c0_i32 : i32, i32
  }
}

</mosaic_0001>

<bundles_post_ra>
// kernel: tpu_custom_call.1
= control target key start
LH: loop header
LB: loop body
LE: loop exit
PB: predicated region body
PF: predicated region fallthrough
CT: control target
= control target key end

     0   :  { %6 = vsyncpa [#allocation3], 0  ;;  %s124_s0 = inlined_call_operand.hbm [shape: f32[1,2048], index: 0, kind: input, shape index: {}]   ;;  %s125_s1 = inlined_call_operand.hbm [shape: f32[1,2048], index: 1, kind: output, shape index: {}]  }
   0x1   :  { %7 = vsyncpa [#allocation4], 0  ;;  %s13_s8 = sshll.u32 %s124_s0, 4  ;;  %s106_s9 = smov [#allocation2]   ;;  %s14_s8 = int_to_ptr.hbm [resolvable:$true] %s13_s8 }
   0x2   :  { %s15_s10 = sshll.u32 %s106_s9, 4  ;;  %s16_s10 = int_to_ptr.vmem [resolvable:$true] %s15_s10 }
   0x3   :  { %18 = dma.hbm_to_vmem [thread:$0]  %s14_s8, 256, %s16_s10, [#allocation3]  }
   0x4   :  { %102 = dma.done.wait [#allocation3], 256  }
   0x5   :  { %103 = vsyncadd [#allocation3], 4294967040  ;;  %v23_v0 = vld [vmem:[#allocation2] sm:$0xff]  ;;  %v24_v1 = vld [vmem:[#allocation2 + $0x8] sm:$0xff]  ;;  %s107_s11 = smov [#allocation5]   ;;  %s42_s0 = sshll.u32 %s125_s1, 4  ;;  %s43_s0 = int_to_ptr.hbm [resolvable:$true] %s42_s0 }
   0x6   :  { %v25_v2 = vadd.f32 3.0, %v23_v0  ;;  %v26_v3 = vadd.f32 3.0, %v24_v1  ;;  %s40_s12 = sshll.u32 %s107_s11, 4  ;;  %s41_s12 = int_to_ptr.vmem [resolvable:$true] %s40_s12 }
   0x8   :  { %v27_v4 = vmax.f32 %v25_v2, 0.0  ;;  %v28_v5 = vmax.f32 %v26_v3, 0.0 }
   0xa   :  { %v29_v6 = vmin.f32 %v27_v4, 6.0  ;;  %v30_v7 = vmin.f32 %v28_v5, 6.0 }
   0xc   :  { %v31_v8 = vmul.f32 0.16666667, %v29_v6  ;;  %v32_v9 = vmul.f32 0.16666667, %v30_v7 }
   0xe   :  { %33 = vst [vmem:[#allocation5] sm:$0xff] %v31_v8 }
   0xf   :  { %34 = vst [vmem:[#allocation5 + $0x8] sm:$0xff] %v32_v9 }
  0x10   :  { %45 = dma.vmem_to_hbm [thread:$0]  %s41_s12, 256, %s43_s0, [#allocation4]  }
  0x11   :  { %104 = dma.done.wait [#allocation4], 256  }
  0x12   :  { %105 = vsyncadd [#allocation4], 4294967040 }
  0x13   :  { %50 = vsyncpa [#allocation3], 1 }
  0x14   :  { %51 = vsyncpa [#allocation4], 1 }

</bundles_post_ra>
